<compile_context>
chip_gen: v7x
topology: tpu7x:2x2x1
jax: 0.10.0
libtpu: 0.0.40
codegen_flags: <defaults>
</compile_context>

<pallas_src>
import numpy as np
import jax
import jax.numpy as jnp
from jax import lax
from jax.experimental import pallas as pl
from jax.experimental.pallas import tpu as pltpu


_CHUNK = 256  # max batch rows per counts working set (vreg-pressure bound)


def nbow_kernel(idx_ref, emb_ref, out_ref):
    """One batch tile: out[b, :] = sum_s emb[ids[b, s], :] via counts @ emb.

    idx_ref: (TB, S)  int32 in VMEM  -- token ids for this batch tile
    emb_ref: (Vp, D)  f32   in VMEM  -- vocab-padded embedding table (resident)
    out_ref: (TB, D)  f32   in VMEM  -- bag-of-words sums for this tile
    """
    TB, S = idx_ref.shape
    Vp, _ = emb_ref.shape
    emb = emb_ref[...]                                   # (Vp, D), resident

    # Static Python loop over <=256-row sub-chunks of this batch tile:
    # amortizes grid-step overhead at large block_b without vreg spills.
    for off in range(0, TB, _CHUNK):
        cs = min(_CHUNK, TB - off)                       # static chunk size
        ids = idx_ref[pl.ds(off, cs), :]                 # (cs, S) static slice
        v_iota = lax.broadcasted_iota(jnp.int32, (cs, Vp), 1)

        # counts[b, v] = #occurrences of token v in row b.  S is static, so
        # this unrolls into lane-broadcast compares + adds on the VPU.  Two
        # accumulators (even/odd s) expose enough ILP for the 4 VALU slots
        # even when cs is small.
        counts_even = jnp.zeros((cs, Vp), jnp.float32)
        counts_odd = jnp.zeros((cs, Vp), jnp.float32)
        for s in range(0, S, 2):
            counts_even = counts_even + (
                ids[:, s:s + 1] == v_iota).astype(jnp.float32)
            if s + 1 < S:
                counts_odd = counts_odd + (
                    ids[:, s + 1:s + 2] == v_iota).astype(jnp.float32)
        counts = counts_even + counts_odd

        # Gather + sum == counts @ table: one MXU matmul per chunk, f32 acc.
        out_ref[pl.ds(off, cs), :] = jnp.dot(
            counts, emb, preferred_element_type=jnp.float32
        ).astype(out_ref.dtype)


def _pick_batch_tile(batch):
    """Largest power-of-two tile (<=1024, multiple of 8) dividing batch,
    capped so the grid has >=2 steps whenever batch >= 16 (v7x megacore)."""
    max_tile = batch if batch < 16 else max(8, ((batch // 2) // 8) * 8)
    for cand in (1024, 512, 256, 128, 64, 32, 16, 8):
        if cand <= max_tile and batch % cand == 0:
            return cand
    return batch  # full extent is always a legal block size (grid=(1,))


def nbow_forward(token_ids, emb_table):
    """token_ids: (B, S) int, emb_table: (V, D) f32 -> (B, D) f32."""
    token_ids = token_ids.astype(jnp.int32)
    emb_table = emb_table.astype(jnp.float32)
    B, S = token_ids.shape
    V, D = emb_table.shape

    # Zero-pad vocab rows to a multiple of 128 -> clean MXU K-tile.  Padded
    # rows are never selected by counts, so the result is unchanged.
    Vp = ((V + 127) // 128) * 128
    if Vp != V:
        emb_table = jnp.pad(emb_table, ((0, Vp - V), (0, 0)))

    block_b = _pick_batch_tile(B)
    grid = (B // block_b,)

    # Real VMEM footprint: Pallas double-buffers every input (including the
    # "resident" table) and the output; last dims are lane-padded to 128.
    lane = 128
    s_pad = ((S + lane - 1) // lane) * lane
    d_pad = ((D + lane - 1) // lane) * lane
    table_bytes = 2 * Vp * d_pad * 4
    ids_bytes = 2 * block_b * s_pad * 4
    out_bytes = 2 * block_b * d_pad * 4
    vmem_limit = table_bytes + ids_bytes + out_bytes + (2 << 20)

    return pl.pallas_call(
        nbow_kernel,
        out_shape=jax.ShapeDtypeStruct((B, D), jnp.float32),
        grid_spec=pltpu.PrefetchScalarGridSpec(
            num_scalar_prefetch=0,
            grid=grid,
            in_specs=[
                # Token-id tile for this batch block (double-buffered).
                pl.BlockSpec((block_b, S), lambda i: (i, 0)),
                # Full (padded) embedding table, resident across grid steps.
                pl.BlockSpec((Vp, D), lambda i: (0, 0)),
            ],
            out_specs=pl.BlockSpec((block_b, D), lambda i: (i, 0)),
        ),
        compiler_params=pltpu.CompilerParams(
            dimension_semantics=("parallel",),   # batch tiles are independent
            vmem_limit_bytes=vmem_limit,
        ),
    )(token_ids, emb_table)


if __name__ == "__main__":
    # Small, module-consistent config.
    embed_dim = 128        # D (lane-aligned)
    n_word = 64            # vocab; table has n_word + 1 rows (last = padding idx)
    bound = 0.1
    batch = 16             # B (>=16 -> grid has 2 steps, exercises megacore path)
    seq = 8                # S

    # Deterministic parameter init matching the PyTorch module's __init__
    # (np.random.RandomState(122).uniform(-bound, bound)).
    emb_np = np.asarray(
        np.random.RandomState(122).uniform(
            low=-bound, high=bound, size=(n_word + 1, embed_dim)
        ),
        dtype=np.float32,
    )
    emb_table = jnp.asarray(emb_np)

    # Deterministic example inputs (ids in [0, n_word], incl. padding idx).
    key = jax.random.PRNGKey(0)
    token_ids = jax.random.randint(
        key, (batch, seq), minval=0, maxval=n_word + 1, dtype=jnp.int32
    )

    out = nbow_forward(token_ids, emb_table)
    out = jax.block_until_ready(out)

    # Pure-JAX reference (gather + sum over seq), against the unpadded table.
    ref = jnp.take(emb_table, token_ids, axis=0).sum(axis=1)
    np.testing.assert_allclose(np.asarray(out), np.asarray(ref), rtol=1e-5, atol=1e-5)

    print("KERNEL_OK")
</pallas_src>

<mosaic_0001>
module attributes {stable_mosaic.version = 11 : i64} {
  func.func @nbow_kernel(%arg0: i32, %arg1: memref<8x8xi32, #tpu.memory_space<vmem>>, %arg2: memref<128x128xf32, #tpu.memory_space<vmem>>, %arg3: memref<8x128xf32, #tpu.memory_space<vmem>>) attributes {dimension_semantics = [#tpu.dimension_semantics<parallel>], iteration_bounds = array<i64: 2>, scalar_prefetch = 0 : i64, scratch_operands = 0 : i64, tpu.core_type = #tpu.core_type<tc>, window_params = [{transform_indices = @transform_0, window_bounds = array<i64: 8, 8>}, {pipeline_mode = #tpu.pipeline_mode<synchronous>, transform_indices = @transform_1, window_bounds = array<i64: 128, 128>}, {transform_indices = @transform_2, window_bounds = array<i64: 8, 128>}]} {
    %c0 = arith.constant 0 : index
    %c0_0 = arith.constant 0 : index
    %0 = vector.load %arg2[%c0, %c0_0] : memref<128x128xf32, #tpu.memory_space<vmem>>, vector<128x128xf32>
    %c0_1 = arith.constant 0 : index
    %c0_2 = arith.constant 0 : index
    %1 = vector.load %arg1[%c0_1, %c0_2] : memref<8x8xi32, #tpu.memory_space<vmem>>, vector<8x8xi32>
    %2 = tpu.iota {dimensions = array<i32: 1>} : vector<8x128xi32>
    %cst = arith.constant 0.000000e+00 : f32
    %3 = vector.broadcast %cst : f32 to vector<8x128xf32>
    %cst_3 = arith.constant 0.000000e+00 : f32
    %4 = vector.broadcast %cst_3 : f32 to vector<8x128xf32>
    %5 = vector.extract_strided_slice %1 {offsets = [0, 0], sizes = [8, 1], strides = [1, 1]} : vector<8x8xi32> to vector<8x1xi32>
    %6 = vector.broadcast %5 : vector<8x1xi32> to vector<8x128xi32>
    %7 = arith.cmpi eq, %6, %2 : vector<8x128xi32>
    %8 = arith.extui %7 : vector<8x128xi1> to vector<8x128xi32>
    %9 = arith.sitofp %8 : vector<8x128xi32> to vector<8x128xf32>
    %10 = arith.addf %3, %9 : vector<8x128xf32>
    %11 = vector.extract_strided_slice %1 {offsets = [0, 1], sizes = [8, 1], strides = [1, 1]} : vector<8x8xi32> to vector<8x1xi32>
    %12 = vector.broadcast %11 : vector<8x1xi32> to vector<8x128xi32>
    %13 = arith.cmpi eq, %12, %2 : vector<8x128xi32>
    %14 = arith.extui %13 : vector<8x128xi1> to vector<8x128xi32>
    %15 = arith.sitofp %14 : vector<8x128xi32> to vector<8x128xf32>
    %16 = arith.addf %4, %15 : vector<8x128xf32>
    %17 = vector.extract_strided_slice %1 {offsets = [0, 2], sizes = [8, 1], strides = [1, 1]} : vector<8x8xi32> to vector<8x1xi32>
    %18 = vector.broadcast %17 : vector<8x1xi32> to vector<8x128xi32>
    %19 = arith.cmpi eq, %18, %2 : vector<8x128xi32>
    %20 = arith.extui %19 : vector<8x128xi1> to vector<8x128xi32>
    %21 = arith.sitofp %20 : vector<8x128xi32> to vector<8x128xf32>
    %22 = arith.addf %10, %21 : vector<8x128xf32>
    %23 = vector.extract_strided_slice %1 {offsets = [0, 3], sizes = [8, 1], strides = [1, 1]} : vector<8x8xi32> to vector<8x1xi32>
    %24 = vector.broadcast %23 : vector<8x1xi32> to vector<8x128xi32>
    %25 = arith.cmpi eq, %24, %2 : vector<8x128xi32>
    %26 = arith.extui %25 : vector<8x128xi1> to vector<8x128xi32>
    %27 = arith.sitofp %26 : vector<8x128xi32> to vector<8x128xf32>
    %28 = arith.addf %16, %27 : vector<8x128xf32>
    %29 = vector.extract_strided_slice %1 {offsets = [0, 4], sizes = [8, 1], strides = [1, 1]} : vector<8x8xi32> to vector<8x1xi32>
    %30 = vector.broadcast %29 : vector<8x1xi32> to vector<8x128xi32>
    %31 = arith.cmpi eq, %30, %2 : vector<8x128xi32>
    %32 = arith.extui %31 : vector<8x128xi1> to vector<8x128xi32>
    %33 = arith.sitofp %32 : vector<8x128xi32> to vector<8x128xf32>
    %34 = arith.addf %22, %33 : vector<8x128xf32>
    %35 = vector.extract_strided_slice %1 {offsets = [0, 5], sizes = [8, 1], strides = [1, 1]} : vector<8x8xi32> to vector<8x1xi32>
    %36 = vector.broadcast %35 : vector<8x1xi32> to vector<8x128xi32>
    %37 = arith.cmpi eq, %36, %2 : vector<8x128xi32>
    %38 = arith.extui %37 : vector<8x128xi1> to vector<8x128xi32>
    %39 = arith.sitofp %38 : vector<8x128xi32> to vector<8x128xf32>
    %40 = arith.addf %28, %39 : vector<8x128xf32>
    %41 = vector.extract_strided_slice %1 {offsets = [0, 6], sizes = [8, 1], strides = [1, 1]} : vector<8x8xi32> to vector<8x1xi32>
    %42 = vector.broadcast %41 : vector<8x1xi32> to vector<8x128xi32>
    %43 = arith.cmpi eq, %42, %2 : vector<8x128xi32>
    %44 = arith.extui %43 : vector<8x128xi1> to vector<8x128xi32>
    %45 = arith.sitofp %44 : vector<8x128xi32> to vector<8x128xf32>
    %46 = arith.addf %34, %45 : vector<8x128xf32>
    %47 = vector.extract_strided_slice %1 {offsets = [0, 7], sizes = [8, 1], strides = [1, 1]} : vector<8x8xi32> to vector<8x1xi32>
    %48 = vector.broadcast %47 : vector<8x1xi32> to vector<8x128xi32>
    %49 = arith.cmpi eq, %48, %2 : vector<8x128xi32>
    %50 = arith.extui %49 : vector<8x128xi1> to vector<8x128xi32>
    %51 = arith.sitofp %50 : vector<8x128xi32> to vector<8x128xf32>
    %52 = arith.addf %40, %51 : vector<8x128xf32>
    %53 = arith.addf %46, %52 : vector<8x128xf32>
    %cst_4 = arith.constant dense<0.000000e+00> : vector<8x128xf32>
    %54 = tpu.matmul %53, %0, %cst_4 {dimension_numbers = #tpu.dot_dimension_numbers<[1], [0], [0], [1], [0, 0, 1, 1], [], []>} : vector<8x128xf32>, vector<128x128xf32>, vector<8x128xf32> -> vector<8x128xf32>
    %c0_5 = arith.constant 0 : index
    %c0_6 = arith.constant 0 : index
    %55 = vector.load %arg3[%c0_5, %c0_6] : memref<8x128xf32, #tpu.memory_space<vmem>>, vector<8x128xf32>
    tpu.vector_store %arg3[%c0_5, %c0_6], %54 {strides = array<i32>} : memref<8x128xf32, #tpu.memory_space<vmem>>, vector<8x128xf32>,
    return
  }
  func.func @transform_0(%arg0: i32) -> (i32, i32) {
    %c0_i32 = arith.constant 0 : i32
    %c0_i32_0 = arith.constant 0 : i32
    return %arg0, %c0_i32 : i32, i32
  }
  func.func @transform_1(%arg0: i32) -> (i32, i32) {
    %c0_i32 = arith.constant 0 : i32
    %c0_i32_0 = arith.constant 0 : i32
    %c0_i32_1 = arith.constant 0 : i32
    return %c0_i32, %c0_i32_0 : i32, i32
  }
  func.func @transform_2(%arg0: i32) -> (i32, i32) {
    %c0_i32 = arith.constant 0 : i32
    %c0_i32_0 = arith.constant 0 : i32
    return %arg0, %c0_i32 : i32, i32
  }
}

</mosaic_0001>

<bundles_post_ra>
// kernel: tpu_custom_call.1
= control target key start
LH: loop header
LB: loop body
LE: loop exit
PB: predicated region body
PF: predicated region fallthrough
CT: control target
= control target key end

     0   :  { %7 = vsyncpa [#allocation3], 0  ;;  %s823_s0 = inlined_call_operand.vmem [shape: s32[16,8], index: 0, kind: input, shape index: {}]   ;;  %s824_s1 = inlined_call_operand.hbm [shape: f32[128,128], index: 1, kind: input, shape index: {}]   ;;  %s825_s2 = inlined_call_operand.hbm [shape: f32[16,128], index: 2, kind: output, shape index: {}]  }
   0x1   :  { %8 = vsyncpa [#allocation4], 0 }
   0x2   :  { %10 = vsyncpa [#allocation4 + $0x1], 0  ;;  %s680_s9 = smov 0   ;;  %s682_s10 = smov 0  }
   0x3   :  { %s684_s11 = smov 0   ;;  %s686_s12 = smov 0  }
   0x4 LB: > { %s701_s13 = sadd.s32 4294967295, %s648_s12   ;;  %s386_s14 = sadd.s32 4294967294, %s648_s12   ;;  %s648_s12 = sphi %s686_s12, %s841_s12   ;;  %s644_s11 = sphi %s684_s11, %s840_s11   ;;  %s640_s10 = sphi %s682_s10, %s839_s10   ;;  %s636_s9 = sphi %s680_s9, %s838_s9  }
   0x5   : > { %s705_s15 = sadd.s32 1, %s648_s12   ;;  %s70_s16 = sadd.s32 1, %s644_s11 }
   0x6   : > { %s67_s17 = ssub.s32 %s648_s12, %s705_s15  ;;  %p80_p0 = scmp.ne.s32.totalorder %s644_s11, %s640_s10 }
   0x7   : > { %p68_p1 = scmp.eq.s32.totalorder %s67_s17, 0  ;;  %p81_p2 = scmp.eq.s32.totalorder %s701_s13, 1 }
   0x8   : > { %p86_p3 = scmp.ne.s32.totalorder %s640_s10, %s636_s9  ;;  %p87_p4 = scmp.eq.s32.totalorder %s386_s14, 1 }
   0x9   : > { %s716_s18 = scalar_select %p68_p1, %s644_s11, %s70_s16  }
   0xa   : > { %p718_p5 = por %p81_p2, %p80_p0  ;;  %p722_p6 = por %p87_p4, %p86_p3 }
   0xb   : > { %p387_p7 = scmp.ge.s32.totalorder %s648_s12, 1  ;;  %p94_p8 = scmp.lt.s32.totalorder %s648_s12, 3 }
   0xc   : > { %s829_s19 = scalar_select %p718_p5, 1, 0 }
   0xd   : > { %s830_s20 = scalar_select %p722_p6, 1, 0 }
   0xe   : > { %p826_p9 = scmp.eq.s32.totalorder %s701_s13, 0  ;;  %p729_p10 = pnand %p387_p7, %p94_p8 }
   0xf   : > { %s650_s22 = smov [#allocation2]   ;;  %s554_s27 = scalar_lea.hbm %s824_s1, 2048 }
  0x10   : > { %s831_s21 = scalar_select %p729_p10, 1, 0 }
  0x11   : > { %s106_s23 = sshll.u32 %s650_s22, 4  ;;  %p488_p11 = pneg %p729_p10  ;;  %s107_s23 = int_to_ptr.vmem [resolvable:$true] %s106_s23 }
  0x12   : > { %p555_p13 = scmp.ne.s32.totalorder %s824_s1, %s554_s27  ;;  %p561_p3 = scmp.lt.u32.totalorder %s554_s27, %s824_s1 }
  0x13   : > { %p737_p12 = pnand %p826_p9, %p488_p11 }
  0x15   : > { %p556_p0 = pneg %p737_p12 }
  0x17   : > { %p557_p1 = pnand %p556_p0, %p555_p13 }
  0x19   : > { %p558_p2 = pneg %p557_p1 }
  0x1b   : > { %p563_p4 = pnand %p561_p3, %p558_p2 }
  0x1d   : > { %566 = shalt.err (!%p563_p4)
}
  0x1e   : > { %s567_s4 = scalar_lea.vmem %s107_s23, 2048  ;;  %p575_p9 = scmp.lt.s32.totalorder %s107_s23, %s107_s23 }
  0x1f   : > { %p568_p7 = scmp.ne.s32.totalorder %s107_s23, %s567_s4  ;;  %p576_p6 = scmp.lt.s32.totalorder %s567_s4, %s567_s4 }
  0x21   : > { %p570_p8 = pnand %p568_p7, %p556_p0  ;;  %p577_p5 = por %p576_p6, %p575_p9 }
  0x23   : > { %p571_p11 = pneg %p570_p8 }
  0x25   : > { %p578_p10 = pnand %p577_p5, %p571_p11 }
  0x27   : > { %581 = shalt.err (!%p578_p10)
}
  0x28   : > { %s651_s5 = smov 128   ;;  %s652_s6 = smov 8  }
  0x29   : > { %491 = dma.hbm_to_vmem [thread:$0]  (!%p737_p12), %s824_s1, 2048, %s107_s23, [#allocation3], %s651_s5, %s651_s5, %s652_s6  }
  0x2a   : > { %p833_p13 = scmp.ne.s32.totalorder %s831_s21, 0 }
  0x2b   : > { %p834_p1 = scmp.eq.s32.totalorder (!%p833_p13), %s701_s13, 0 }
  0x2c   : > { %129 = sbr.rel (%p833_p13) target bundleno = 439 (0x1b7), region = 28 }
  0x33   : > { %627 = dma.done.wait (%p834_p1), [#allocation3], 2048   ;;  %p835_p0 = pmov %p834_p1 }
  0x34   : > { %p150_p5 = scmp.lt.s32.totalorder %s701_s13, 1  ;;  %v653_v0 = vmov 2   ;;  %v654_v1 = vmov 0   ;;  %v655_v2 = vmov 0.0|0.0   ;;  %v154_v4 = vld [vmem:[#allocation2] sm:$0xff]  ;;  %v155_v5 = vld [vmem:[#allocation2 + $0x8] sm:$0xff]  ;;  %v171_v37 = vlaneseq }
  0x35   : > { %629 = vsyncadd (%p835_p0), [#allocation3], 4294965248  ;;  %547 = vset.pattern.permute.xlu1 %v653_v0  ;;  %545 = vset.pattern.permute.xlu0 %v654_v1  ;;  %v459_v6 = vpack.c.bf16 %v155_v5, %v154_v4  ;;  %v156_v7 = vld [vmem:[#allocation2 + $0x10] sm:$0xff]  ;;  %v157_v8 = vld [vmem:[#allocation2 + $0x18] sm:$0xff]  ;;  %v656_v10 = vmov 3   ;;  %v657_v11 = vmov 1  }
  0x36   : > { %s151_s14 = scalar_select %p150_p5, %s701_s13, 1  ;;  %458 = vmatprep.subr.bf16.mxu0 %v655_v2  ;;  %v462_v9 = vpack.c.bf16 %v157_v8, %v156_v7  ;;  %v158_v12 = vld [vmem:[#allocation2 + $0x20] sm:$0xff]  ;;  %v159_v13 = vld [vmem:[#allocation2 + $0x28] sm:$0xff]  ;;  %v160_v15 = vld [vmem:[#allocation2 + $0x30] sm:$0xff]  ;;  %v658_v17 = vmov 4   ;;  %v659_v18 = vmov 5  }
  0x37   : > { %460 = vmatpush3.bf16.msra.mxu0 %v459_v6  ;;  %v465_v14 = vpack.c.bf16 %v159_v13, %v158_v12  ;;  %v161_v16 = vld [vmem:[#allocation2 + $0x38] sm:$0xff]  ;;  %v162_v20 = vld [vmem:[#allocation2 + $0x40] sm:$0xff]  ;;  %v163_v21 = vld [vmem:[#allocation2 + $0x48] sm:$0xff]  ;;  %v660_v22 = vmov 6   ;;  %v661_v23 = vmov 7   ;;  %vm662_vm0 = vmmov 0  }
  0x38   : > { %s393_s16 = sshll.u32 %s151_s14, 3  ;;  %461 = vmatprep.subr.bf16.mxu0 %v655_v2  ;;  %v468_v19 = vpack.c.bf16 %v161_v16, %v160_v15  ;;  %v471_v24 = vpack.c.bf16 %v163_v21, %v162_v20  ;;  %v164_v25 = vld [vmem:[#allocation2 + $0x50] sm:$0xff]  ;;  %v165_v26 = vld [vmem:[#allocation2 + $0x58] sm:$0xff]  ;;  %v166_v28 = vld [vmem:[#allocation2 + $0x60] sm:$0xff]  ;;  %v663_v31 = vmov 0.0   ;;  %v172_v40 = vand.u32 127, %v171_v37 }
  0x39   : > { %s153_s22 = scalar_lea.vmem %s823_s0, %s393_s16  ;;  %v474_v27 = vpack.c.bf16 %v165_v26, %v164_v25  ;;  %v167_v29 = vld [vmem:[#allocation2 + $0x68] sm:$0xff]  ;;  %455 = vmatprep.mubr.msk.f32.mxu0 %vm662_vm0, %v663_v31  ;;  %v168_v32 = vld [vmem:[#allocation2 + $0x70] sm:$0xff]  ;;  %v169_v33 = vld [vmem:[#allocation2 + $0x78] sm:$0xff]  ;;  %s147_s23 = sand.u32 1, %s640_s10  }
  0x3a   : > { %v170_v3 = vld [vmem:[%s153_s22] sm:$0xff]  ;;  %v477_v30 = vpack.c.bf16 %v167_v29, %v166_v28  ;;  %v480_v34 = vpack.c.bf16 %v169_v33, %v168_v32  ;;  %s392_s24 = sshll.u32 %s147_s23, 3  ;;  %s403_s27 = sshll.u32 %s701_s13, 7 }
  0x3b   : > { %188 = vperm.xlu1 %547, %v170_v3   ;;  %174 = vperm.xlu0 %545, %v170_v3   ;;  %s149_s25 = scalar_lea.vmem [#allocation5], %s392_s24  ;;  %s783_s30 = scalar_lea.hbm %s825_s2, %s403_s27 }
  0x3c   : > { %463 = vmatpush3.bf16.msra.mxu0 %v462_v9  ;;  %s315_s26 = sshll.u32 %s149_s25, 4  ;;  %s302_s3 = scalar_lea.sflag [#allocation4], %s147_s23  ;;  %s778_s26 = int_to_ptr.vmem [resolvable:$true] %s315_s26 }
  0x3d   : > { %464 = vmatprep.subr.bf16.mxu0 %v655_v2  ;;  %s582_s4 = scalar_lea.vmem %s778_s26, 128  ;;  %p836_p9 = scmp.ne.s32.totalorder %s829_s19, 0 }
  0x3e   : > { %p583_p6 = scmp.ne.s32.totalorder %s778_s26, %s582_s4  ;;  %s664_s13 = smov [#allocation5]  }
  0x3f   : > { %548 = vset.pattern.permute.xlu1 %v656_v10  ;;  %546 = vset.pattern.permute.xlu0 %v657_v11  ;;  %s586_s5 = sshll.u32 %s664_s13, 4  ;;  %s587_s5 = int_to_ptr.vmem [resolvable:$false] %s586_s5 }
  0x40   : > { %195 = vperm.xlu1 %548, %v170_v3   ;;  %181 = vperm.xlu0 %546, %v170_v3   ;;  %p584_p10 = pnand %p583_p6, %p836_p9  ;;  %s588_s6 = scalar_lea.vmem %s587_s5, 256 }
  0x41   : > { %466 = vmatpush3.bf16.msra.mxu0 %v465_v14  ;;  %p589_p2 = scmp.lt.s32.totalorder %s778_s26, %s587_s5  ;;  %p590_p3 = scmp.lt.s32.totalorder %s588_s6, %s582_s4 }
  0x42   : > { %467 = vmatprep.subr.bf16.mxu0 %v655_v2  ;;  %p585_p12 = pneg %p584_p10 }
  0x43   : > { %p591_p4 = por %p590_p3, %p589_p2 }
  0x44   : > { %549 = vset.pattern.permute.xlu1 %v658_v17  ;;  %550 = vset.pattern.permute.xlu0 %v659_v18 }
  0x45   : > { %202 = vperm.xlu1 %549, %v170_v3   ;;  %209 = vperm.xlu0 %550, %v170_v3   ;;  %p592_p7 = pnand %p591_p4, %p585_p12 }
  0x46   : > { %469 = vmatpush3.bf16.msra.mxu0 %v468_v19 }
  0x47   : > { %470 = vmatprep.subr.bf16.mxu0 %v655_v2 }
  0x49   : > { %551 = vset.pattern.permute.xlu1 %v660_v22  ;;  %553 = vset.pattern.permute.xlu0 %v661_v23 }
  0x4a   : > { %216 = vperm.xlu1 %551, %v170_v3   ;;  %472 = vmatpush3.bf16.msra.mxu0 %v471_v24 }
  0x4b   : > { %473 = vmatprep.subr.bf16.mxu0 %v655_v2 }
  0x4e   : > { %552 = vset.pattern.permute.xlu1 %v661_v23  ;;  %475 = vmatpush3.bf16.msra.mxu0 %v474_v27 }
  0x4f   : > { %223 = vperm.xlu1 %552, %v170_v3   ;;  %476 = vmatprep.subr.bf16.mxu0 %v655_v2 }
  0x52   : > { %478 = vmatpush3.bf16.msra.mxu0 %v477_v30 }
  0x53   : > { %479 = vmatprep.subr.bf16.mxu0 %v655_v2 }
  0x56   : > { %481 = vmatpush3.bf16.msra.mxu0 %v480_v34 }
  0xba   : > { %v189_v35 = vpop.permute.xlu1 %188  ;;  %v175_v36 = vpop.permute.xlu0 %174 }
  0xbb   : > { %vm190_vm1 = vcmp.eq.s32.totalorder %v189_v35, %v172_v40  ;;  %vm176_vm2 = vcmp.eq.s32.totalorder %v175_v36, %v172_v40 }
  0xbc   : > { %v396_v44 = vsel %vm190_vm1, 1.0, %v663_v31  ;;  %v394_v45 = vsel %vm176_vm2, 1.0, %v663_v31 }
  0xbd   : > { %v193_v50 = vadd.f32 %v396_v44, %v394_v45 }
  0xbf   : > { %v196_v38 = vpop.permute.xlu1 %195  ;;  %v182_v39 = vpop.permute.xlu0 %181 }
  0xc0   : > { %vm197_vm3 = vcmp.eq.s32.totalorder %v196_v38, %v172_v40  ;;  %vm183_vm4 = vcmp.eq.s32.totalorder %v182_v39, %v172_v40 }
  0xc1   : > { %v397_v46 = vsel %vm197_vm3, 1.0, %v663_v31  ;;  %v395_v47 = vsel %vm183_vm4, 1.0, %v663_v31 }
  0xc2   : > { %v200_v51 = vadd.f32 %v397_v46, %v395_v47 }
  0xc4   : > { %v203_v41 = vpop.permute.xlu1 %202  ;;  %v210_v42 = vpop.permute.xlu0 %209 }
  0xc5   : > { %vm204_vm5 = vcmp.eq.s32.totalorder %v203_v41, %v172_v40  ;;  %vm211_vm6 = vcmp.eq.s32.totalorder %v210_v42, %v172_v40 }
  0xc6   : > { %v398_v48 = vsel %vm204_vm5, 1.0, %v663_v31  ;;  %v399_v49 = vsel %vm211_vm6, 1.0, %v663_v31 }
  0xc7   : > { %v207_v54 = vadd.f32 %v398_v48, %v193_v50  ;;  %v214_v55 = vadd.f32 %v399_v49, %v200_v51 }
  0xc9   : > { %v217_v43 = vpop.permute.xlu1 %216 }
  0xca   : > { %vm218_vm7 = vcmp.eq.s32.totalorder %v217_v43, %v172_v40 }
  0xcb   : > { %v400_v52 = vsel %vm218_vm7, 1.0, %v663_v31 }
  0xcc   : > { %v221_v57 = vadd.f32 %v400_v52, %v207_v54 }
  0xce   : > { %v224_v53 = vpop.permute.xlu1 %223 }
  0xcf   : > { %vm225_vm8 = vcmp.eq.s32.totalorder %v224_v53, %v172_v40 }
  0xd0   : > { %v401_v56 = vsel %vm225_vm8, 1.0, %v663_v31 }
  0xd1   : > { %v228_v58 = vadd.f32 %v401_v56, %v214_v55 }
  0xd3   : > { %v229_v59 = vadd.f32 %v228_v58, %v221_v57 }
  0xd5   : > { %456 = vmatmul.mubr.f32.vlgmr.msra.gmra.mrb[0].mxu0 %v229_v59 }
 0x1a8   : > { %v296_v60 = vpop.f32.mrb[0].mxu0 }
 0x1a9   : > { %300 = vst [vmem:[%s149_s25] sm:$0xff] %v296_v60  ;;  %v457_v61 = vpop.f32.mrb[1].mxu0 }
 0x1aa   : > { %595 = shalt.err (!%p592_p7)
}
 0x1ab   : > { %s596_s7 = scalar_lea.hbm %s783_s30, 128  ;;  %s600_s16 = scalar_lea.hbm %s825_s2, 256 }
 0x1ac   : > { %p597_p8 = scmp.ne.s32.totalorder %s783_s30, %s596_s7  ;;  %p601_p1 = scmp.lt.u32.totalorder %s783_s30, %s825_s2 }
 0x1ad   : > { %p602_p0 = scmp.lt.u32.totalorder %s600_s16, %s596_s7  ;;  %p604_p6 = scmp.lt.u32.totalorder %s596_s7, %s783_s30 }
 0x1ae   : > { %p598_p11 = pnand %p597_p8, %p836_p9 }
 0x1af   : > { %p603_p5 = por %p602_p0, %p601_p1 }
 0x1b0   : > { %p599_p13 = pneg %p598_p11 }
 0x1b1   : > { %p605_p10 = por %p604_p6, %p603_p5 }
 0x1b3   : > { %p606_p12 = pnand %p605_p10, %p599_p13 }
 0x1b5   : > { %609 = shalt.err (!%p606_p12)
}
 0x1b6   : > { %486 = dma.vmem_to_hbm [thread:$0]  (%p836_p9), %s778_s26, 128, %s783_s30, %s302_s3  }
 0x1b7 PF: > { %p498_p2 = scmp.ge.s32.totalorder %s648_s12, 2  ;;  %s327_s22 = sand.u32 1, %s636_s9  }
 0x1b8   : > { %p837_p3 = scmp.ne.s32.totalorder %s830_s20, 0  ;;  %s328_s23 = scalar_lea.sflag [#allocation4], %s327_s22 }
 0x1ba   : > { %p493_p4 = pnand %p498_p2, %p837_p3 }
 0x1bc   : > { %631 = dma.done.wait (!%p493_p4), %s328_s23, 128  }
 0x1bd   : > { %633 = vsyncadd (!%p493_p4), %s328_s23, 4294967168  ;;  %p13_p7 = scmp.ge.s32.totalorder %s705_s15, 4   ;;  %s838_s9 = smov %s640_s10 }
 0x1be   : > { %s839_s10 = smov %s644_s11  ;;  %s840_s11 = smov %s716_s18 }
 0x1bf   : > { %s841_s12 = smov %s705_s15  ;;  %15 = sbr.rel (!%p13_p7) target bundleno = 4 (0x4), region = 68 }
 0x1c6   :  { %333 = vsyncpa [#allocation3], 1 }
 0x1c7   :  { %335 = vsyncpa [#allocation3 + $0x1], 1 }
 0x1c8   :  { %336 = vsyncpa [#allocation4], 1 }
 0x1c9   :  { %338 = vsyncpa [#allocation4 + $0x1], 1 }

</bundles_post_ra>
